<compile_context>
chip_gen: v7x
topology: tpu7x:2x2x1
jax: 0.10.0
libtpu: 0.0.40
codegen_flags: <defaults>
</compile_context>

<pallas_src>
import jax
import jax.numpy as jnp
from jax.experimental import pallas as pl
from jax.experimental.pallas import tpu as pltpu


# ---------------------------------------------------------------------------
# 1) One-shot conditioning projection:
#      scale_plus_1 = cond @ w_scale + 1 ,  shift = cond @ w_shift
# ---------------------------------------------------------------------------
def _proj_kernel(cond_ref, w_scale_ref, w_shift_ref, scale_p1_ref, shift_ref):
    cond = cond_ref[...]
    scale_p1_ref[...] = jnp.dot(cond, w_scale_ref[...],
                                preferred_element_type=jnp.float32) + 1.0
    shift_ref[...] = jnp.dot(cond, w_shift_ref[...],
                             preferred_element_type=jnp.float32)


def _project(cond, w_scale, w_shift):
    n = cond.shape[0]
    c = w_scale.shape[1]
    vmem = pl.BlockSpec(memory_space=pltpu.MemorySpace.VMEM)
    return pl.pallas_call(
        _proj_kernel,
        out_shape=(jax.ShapeDtypeStruct((n, c), jnp.float32),
                   jax.ShapeDtypeStruct((n, c), jnp.float32)),
        in_specs=[vmem, vmem, vmem],
        out_specs=(vmem, vmem),
    )(cond, w_scale, w_shift)


# ---------------------------------------------------------------------------
# 2) Elementwise modulation over the (N*C, H*W) view:
#      out = shift + x * (scale + 1)
# ---------------------------------------------------------------------------
def _modulation_kernel(scale_p1_ref, shift_ref, x_ref, o_ref):
    x = x_ref[...]
    s = scale_p1_ref[...].astype(x.dtype)   # (rows, 1), broadcast along lanes
    b = shift_ref[...].astype(x.dtype)
    o_ref[...] = (b + x * s).astype(o_ref.dtype)


def _pick_row_block(rows, max_rows=1024):
    """Full extent when small/odd; otherwise a multiple of 8 dividing `rows`."""
    if rows <= max_rows or rows % 8 != 0:
        return rows
    rb = max_rows - (max_rows % 8)
    while rows % rb != 0:
        rb -= 8
    return max(rb, 8)


def _pick_col_block(hw, row_block, itemsize, budget_bytes):
    """Largest multiple of 128 dividing hw under the per-buffer VMEM budget."""
    if hw % 128 != 0:
        return hw                          # full-extent block is always legal
    max_cols = max(128, budget_bytes // max(1, row_block * itemsize))
    tile = max(128, min(hw, (max_cols // 128) * 128))
    while hw % tile != 0:
        tile -= 128
    return tile


def modulation2d(x_nchw, cond, weight_t, *, vmem_block_bytes=4 << 20):
    """Pallas forward of Modulation2d.

    x_nchw:   (N, C, H, W) activations.
    cond:     (N, F)       conditioning vector (state['cond']).
    weight_t: (F, 2C)      Linear(F, 2C, bias=False) weight, pre-transposed.
    """
    n, c, h, w = x_nchw.shape
    f, two_c = weight_t.shape
    assert two_c == 2 * c and cond.shape == (n, f)

    # Pre-split the weight so the projection kernel never slices along lanes.
    w_scale = weight_t[:, :c]
    w_shift = weight_t[:, c:]

    # Hoisted projection (runs once; keeps the per-tile body matmul-free).
    scale_p1, shift = _project(cond, w_scale, w_shift)        # (N, C) f32 each
    scale_p1 = scale_p1.reshape(n * c, 1)
    shift = shift.reshape(n * c, 1)

    # Collapse (N, C) into the sublane axis; H*W is the lane-dense axis.
    rows, hw = n * c, h * w
    x = x_nchw.reshape(rows, hw)

    row_block = _pick_row_block(rows)
    col_block = _pick_col_block(hw, row_block, x.dtype.itemsize, vmem_block_bytes)
    grid = (rows // row_block, hw // col_block)

    out = pl.pallas_call(
        _modulation_kernel,
        out_shape=jax.ShapeDtypeStruct((rows, hw), x.dtype),
        grid_spec=pltpu.PrefetchScalarGridSpec(
            num_scalar_prefetch=0,
            grid=grid,
            in_specs=[
                pl.BlockSpec((row_block, 1), lambda r, s: (r, 0)),   # scales + 1
                pl.BlockSpec((row_block, 1), lambda r, s: (r, 0)),   # shifts
                pl.BlockSpec((row_block, col_block), lambda r, s: (r, s)),
            ],
            out_specs=pl.BlockSpec((row_block, col_block), lambda r, s: (r, s)),
        ),
        compiler_params=pltpu.CompilerParams(
            dimension_semantics=("parallel", "parallel"),
            vmem_limit_bytes=48 << 20,   # < 64 MiB v7x physical; plenty on v5e/v6e
        ),
    )(scale_p1, shift, x)
    return out.reshape(n, c, h, w)


if __name__ == "__main__":
    # Small shapes consistent with the module: batch=2, c_out=4, H=W=16, feats_in=32.
    N, C, H, W, F = 2, 4, 16, 16, 32

    key = jax.random.PRNGKey(0)
    kx, kc, kw = jax.random.split(key, 3)

    x = jax.random.normal(kx, (N, C, H, W), dtype=jnp.float32)       # NCHW input
    cond = jax.random.normal(kc, (N, F), dtype=jnp.float32)          # state['cond']
    # Deterministic Linear(F, 2C, bias=False) weight; torch stores (out, in) = (2C, F).
    w_torch_layout = jax.random.normal(kw, (2 * C, F), dtype=jnp.float32) * 0.05
    w_t = w_torch_layout.T                                           # (F, 2C)

    out = jax.block_until_ready(jax.jit(modulation2d)(x, cond, w_t))

    # Pure-JAX reference of the PyTorch forward.
    proj = cond @ w_t                                                # (N, 2C)
    scales, shifts = proj[:, :C], proj[:, C:]
    ref = shifts[:, :, None, None] + x * (scales[:, :, None, None] + 1.0)

    assert out.shape == (N, C, H, W)
    assert jnp.allclose(out, ref, atol=1e-5, rtol=1e-5)
    print("KERNEL_OK")
</pallas_src>

<mosaic_0001>
module attributes {stable_mosaic.version = 11 : i64} {
  func.func @_proj_kernel(%arg0: memref<2x32xf32, #tpu.memory_space<vmem>>, %arg1: memref<32x4xf32, #tpu.memory_space<vmem>>, %arg2: memref<32x4xf32, #tpu.memory_space<vmem>>, %arg3: memref<2x4xf32, #tpu.memory_space<vmem>>, %arg4: memref<2x4xf32, #tpu.memory_space<vmem>>) attributes {dimension_semantics = [], scalar_prefetch = 0 : i64, scratch_operands = 0 : i64, tpu.core_type = #tpu.core_type<tc>} {
    %c0 = arith.constant 0 : index
    %c0_0 = arith.constant 0 : index
    %0 = vector.load %arg0[%c0, %c0_0] : memref<2x32xf32, #tpu.memory_space<vmem>>, vector<2x32xf32>
    %c0_1 = arith.constant 0 : index
    %c0_2 = arith.constant 0 : index
    %1 = vector.load %arg1[%c0_1, %c0_2] : memref<32x4xf32, #tpu.memory_space<vmem>>, vector<32x4xf32>
    %cst = arith.constant dense<0.000000e+00> : vector<2x4xf32>
    %2 = tpu.matmul %0, %1, %cst {dimension_numbers = #tpu.dot_dimension_numbers<[1], [0], [0], [1], [0, 0, 1, 1], [], []>} : vector<2x32xf32>, vector<32x4xf32>, vector<2x4xf32> -> vector<2x4xf32>
    %cst_3 = arith.constant 1.000000e+00 : f32
    %3 = vector.broadcast %cst_3 : f32 to vector<2x4xf32>
    %4 = arith.addf %2, %3 : vector<2x4xf32>
    %c0_4 = arith.constant 0 : index
    %c0_5 = arith.constant 0 : index
    %5 = vector.load %arg3[%c0_4, %c0_5] : memref<2x4xf32, #tpu.memory_space<vmem>>, vector<2x4xf32>
    tpu.vector_store %arg3[%c0_4, %c0_5], %4 {strides = array<i32>} : memref<2x4xf32, #tpu.memory_space<vmem>>, vector<2x4xf32>,
    %c0_6 = arith.constant 0 : index
    %c0_7 = arith.constant 0 : index
    %6 = vector.load %arg2[%c0_6, %c0_7] : memref<32x4xf32, #tpu.memory_space<vmem>>, vector<32x4xf32>
    %cst_8 = arith.constant dense<0.000000e+00> : vector<2x4xf32>
    %7 = tpu.matmul %0, %6, %cst_8 {dimension_numbers = #tpu.dot_dimension_numbers<[1], [0], [0], [1], [0, 0, 1, 1], [], []>} : vector<2x32xf32>, vector<32x4xf32>, vector<2x4xf32> -> vector<2x4xf32>
    %c0_9 = arith.constant 0 : index
    %c0_10 = arith.constant 0 : index
    %8 = vector.load %arg4[%c0_9, %c0_10] : memref<2x4xf32, #tpu.memory_space<vmem>>, vector<2x4xf32>
    tpu.vector_store %arg4[%c0_9, %c0_10], %7 {strides = array<i32>} : memref<2x4xf32, #tpu.memory_space<vmem>>, vector<2x4xf32>,
    return
  }
}

module attributes {stable_mosaic.version = 11 : i64} {
  func.func @_modulation_kernel(%arg0: i32, %arg1: i32, %arg2: memref<8x1xf32, #tpu.memory_space<vmem>>, %arg3: memref<8x1xf32, #tpu.memory_space<vmem>>, %arg4: memref<8x256xf32, #tpu.memory_space<vmem>>, %arg5: memref<8x256xf32, #tpu.memory_space<vmem>>) attributes {dimension_semantics = [#tpu.dimension_semantics<parallel>, #tpu.dimension_semantics<parallel>], iteration_bounds = array<i64: 1, 1>, scalar_prefetch = 0 : i64, scratch_operands = 0 : i64, tpu.core_type = #tpu.core_type<tc>, window_params = [{transform_indices = @transform_0, window_bounds = array<i64: 8, 1>}, {transform_indices = @transform_1, window_bounds = array<i64: 8, 1>}, {transform_indices = @transform_2, window_bounds = array<i64: 8, 256>}, {transform_indices = @transform_3, window_bounds = array<i64: 8, 256>}]} {
    %c0 = arith.constant 0 : index
    %c0_0 = arith.constant 0 : index
    %0 = vector.load %arg4[%c0, %c0_0] : memref<8x256xf32, #tpu.memory_space<vmem>>, vector<8x256xf32>
    %c0_1 = arith.constant 0 : index
    %c0_2 = arith.constant 0 : index
    %1 = vector.load %arg2[%c0_1, %c0_2] : memref<8x1xf32, #tpu.memory_space<vmem>>, vector<8x1xf32>
    %c0_3 = arith.constant 0 : index
    %c0_4 = arith.constant 0 : index
    %2 = vector.load %arg3[%c0_3, %c0_4] : memref<8x1xf32, #tpu.memory_space<vmem>>, vector<8x1xf32>
    %3 = vector.broadcast %1 : vector<8x1xf32> to vector<8x256xf32>
    %4 = arith.mulf %0, %3 : vector<8x256xf32>
    %5 = vector.broadcast %2 : vector<8x1xf32> to vector<8x256xf32>
    %6 = arith.addf %5, %4 : vector<8x256xf32>
    %c0_5 = arith.constant 0 : index
    %c0_6 = arith.constant 0 : index
    %7 = vector.load %arg5[%c0_5, %c0_6] : memref<8x256xf32, #tpu.memory_space<vmem>>, vector<8x256xf32>
    tpu.vector_store %arg5[%c0_5, %c0_6], %6 {strides = array<i32>} : memref<8x256xf32, #tpu.memory_space<vmem>>, vector<8x256xf32>,
    return
  }
  func.func @transform_0(%arg0: i32, %arg1: i32) -> (i32, i32) {
    %c0_i32 = arith.constant 0 : i32
    %c0_i32_0 = arith.constant 0 : i32
    return %arg0, %c0_i32 : i32, i32
  }
  func.func @transform_1(%arg0: i32, %arg1: i32) -> (i32, i32) {
    %c0_i32 = arith.constant 0 : i32
    %c0_i32_0 = arith.constant 0 : i32
    return %arg0, %c0_i32 : i32, i32
  }
  func.func @transform_2(%arg0: i32, %arg1: i32) -> (i32, i32) {
    %c0_i32 = arith.constant 0 : i32
    return %arg0, %arg1 : i32, i32
  }
  func.func @transform_3(%arg0: i32, %arg1: i32) -> (i32, i32) {
    %c0_i32 = arith.constant 0 : i32
    return %arg0, %arg1 : i32, i32
  }
}

</mosaic_0001>

<bundles_post_ra>
// kernel: modulation2d.3
= control target key start
LH: loop header
LB: loop body
LE: loop exit
PB: predicated region body
PF: predicated region fallthrough
CT: control target
= control target key end

     0   :  { %v40_v0 = vmov 0   ;;  %s79_s0 = inlined_call_operand.vmem [shape: f32[8,1], index: 0, kind: input, shape index: {}]   ;;  %s80_s1 = inlined_call_operand.vmem [shape: f32[8,1], index: 1, kind: input, shape index: {}]   ;;  %s81_s2 = inlined_call_operand.vmem [shape: f32[8,256], index: 2, kind: input, shape index: {}]   ;;  %s82_s3 = inlined_call_operand.vmem [shape: f32[8,256], index: 3, kind: output, shape index: {}]  }
   0x1   :  { %39 = vset.pattern.permute.xlu0 %v40_v0  ;;  %v16_v1 = vld [vmem:[%s79_s0] sm:$0xff]  ;;  %v15_v4 = vld [vmem:[%s81_s2 + $0x8] sm:$0xff] }
   0x2   :  { %20 = vperm.xlu0 %39, %v16_v1   ;;  %v17_v2 = vld [vmem:[%s80_s1] sm:$0xff] }
   0x3   :  { %v14_v3 = vld [vmem:[%s81_s2] sm:$0xff] }
   0x6   :  { %27 = vperm.xlu0 %39, %v17_v2  }
  0x81   :  { %v21_v5 = vpop.permute.xlu0 %20 }
  0x82   :  { %v23_v6 = vmul.f32 %v21_v5, %v14_v3  ;;  %v24_v7 = vmul.f32 %v21_v5, %v15_v4 }
  0x85   :  { %v28_v8 = vpop.permute.xlu0 %27 }
  0x86   :  { %v30_v9 = vadd.f32 %v28_v8, %v23_v6  ;;  %v31_v10 = vadd.f32 %v28_v8, %v24_v7 }
  0x88   :  { %32 = vst [vmem:[%s82_s3] sm:$0xff] %v30_v9  ;;  %33 = vst [vmem:[%s82_s3 + $0x8] sm:$0xff] %v31_v10 }

// kernel: modulation2d.2
= control target key start
LH: loop header
LB: loop body
LE: loop exit
PB: predicated region body
PF: predicated region fallthrough
CT: control target
= control target key end

     0   :  { %v229_v0 = vmov 0.0|0.0   ;;  %vm230_vm0 = vmmov 0   ;;  %v231_v8 = vmov 0.0   ;;  %vm21_vm1 = vcmask 261120   ;;  %s290_s1 = inlined_call_operand.vmem [shape: f32[32,4], index: 1, kind: input, shape index: {}]   ;;  %s291_s2 = inlined_call_operand.vmem [shape: f32[32,4], index: 2, kind: input, shape index: {}]   ;;  %s292_s0 = inlined_call_operand.vmem [shape: f32[2,32], index: 0, kind: input, shape index: {}]   ;;  %s293_s4 = inlined_call_operand.vmem [shape: f32[2,4], index: 4, kind: output, shape index: {1}]   ;;  %s294_s3 = inlined_call_operand.vmem [shape: f32[2,4], index: 3, kind: output, shape index: {0}]  }
   0x1   :  { %214 = vmatprep.subr.bf16.mxu0 %v229_v0  ;;  %v17_v1 = vld [vmem:[%s290_s1] sm:$0xff]  ;;  %v18_v2 = vld [vmem:[%s290_s1 + $0x8] sm:$0xff]  ;;  %220 = vmatprep.subr.bf16.mxu1 %v229_v0  ;;  %v19_v6 = vld [vmem:[%s290_s1 + $0x10] sm:$0xff]  ;;  %vm95_vm2 = vcmask 25600  }
   0x2   :  { %v97_v3 = vld [vmem:[%s291_s2] sm:$0xff]  ;;  %v215_v4 = vpack.c.bf16 %v18_v2, %v17_v1  ;;  %v98_v5 = vld [vmem:[%s291_s2 + $0x8] sm:$0xff]  ;;  %v20_v7 = vld [vmem:[%s290_s1 + $0x18] sm:$0xff]  ;;  %200 = vmatprep.mubr.msk.f32.mxu0 %vm230_vm0, %v231_v8  ;;  %211 = vmatprep.mubr.msk.f32.mxu1 %vm230_vm0, %v231_v8 }
   0x3   :  { %v221_v9 = vpack.c.bf16 %v98_v5, %v97_v3  ;;  %v99_v10 = vld [vmem:[%s291_s2 + $0x10] sm:$0xff]  ;;  %v100_v11 = vld [vmem:[%s291_s2 + $0x18] sm:$0xff]  ;;  %v218_v12 = vpack.c.bf16 %v20_v7, %v19_v6  ;;  %v16_v14 = vld [vmem:[%s292_s0] sm:$0x3] }
   0x4   :  { %216 = vmatpush3.bf16.msra.mxu0 %v215_v4  ;;  %v224_v13 = vpack.c.bf16 %v100_v11, %v99_v10 }
   0x5   :  { %222 = vmatpush3.bf16.msra.mxu1 %v221_v9  ;;  %217 = vmatprep.subr.bf16.mxu0 %v229_v0 }
   0x6   :  { %223 = vmatprep.subr.bf16.mxu1 %v229_v0 }
   0x8   :  { %219 = vmatpush3.bf16.msra.mxu0 %v218_v12 }
   0x9   :  { %225 = vmatpush3.bf16.msra.mxu1 %v224_v13 }
   0xb   :  { %201 = vmatmul.mubr.msk.f32.vlgmr.msra.gmra.mrb[0].mxu0 %vm21_vm1, %v16_v14 }
   0xc   :  { %212 = vmatmul.mubr.msk.f32.vlgmr.msra.gmra.mrb[0].mxu1 %vm21_vm1, %v16_v14 }
  0xde   :  { %v91_v15 = vpop.f32.mrb[0].mxu0 }
  0xdf   :  { %v92_v16 = vadd.f32 1.0, %v91_v15  ;;  %v202_v17 = vpop.f32.mrb[1].mxu0  ;;  %v167_v18 = vpop.f32.mrb[0].mxu1 }
  0xe0   :  { %171 = vst.msk [vmem:[%s293_s4] sm:$0x3] %vm95_vm2, %v167_v18  ;;  %v213_v19 = vpop.f32.mrb[1].mxu1 }
  0xe1   :  { %96 = vst.msk [vmem:[%s294_s3] sm:$0x3] %vm95_vm2, %v92_v16 }

</bundles_post_ra>
